<compile_context>
chip_gen: v5e
topology: v5e:2x2
jax: 0.10.0
libtpu: 0.0.40
codegen_flags: <defaults>
</compile_context>

<pallas_src>
import functools

import jax
import jax.numpy as jnp
from jax.experimental import pallas as pl
from jax.experimental.pallas import tpu as pltpu

LEAKY_SLOPE = 0.01  # nn.LeakyReLU() default negative_slope


def _leaky_relu(h):
    # Equivalent to where(h>0, h, slope*h) for slope<1; 2 VALU ops instead of 3.
    return jnp.maximum(h, LEAKY_SLOPE * h)


def _round_up(n, m):
    return ((n + m - 1) // m) * m


def _choose_tile(n, tile_n):
    """Batch tile: large multiple of 128, never bigger than the padded batch,
    and split so v7x's two TensorCores both get work when the batch allows it."""
    tile_n = max(128, _round_up(tile_n, 128))
    n128 = _round_up(n, 128)
    tile = min(tile_n, n128)
    if n128 >= 2 * 128 and tile >= n128:
        tile = _round_up(n128 // 2, 128)   # keep >= 2 grid steps for megacore
    return tile


def _disc_kernel(xT_ref,
                 w1_ref, b1_ref,
                 w2_ref, b2_ref,
                 w3_ref, b3_ref,
                 w4_ref, b4_ref,
                 o_ref):
    # xT_ref: (2, tile)  -- batch rides the 128-lane axis (feature-major layout).
    mxu_dtype = w2_ref.dtype          # bf16 on the fast path, f32 in exact mode
    xT = xT_ref[...]

    # Layer 1: in=2 -> out=128.  K=2 would waste an MXU pass; do two VPU broadcast
    # FMAs instead:  (128,1)*(1,tile) + (128,1)*(1,tile) + b.   (f32 on all chips)
    h = (w1_ref[:, 0:1] * xT[0:1, :]
         + w1_ref[:, 1:2] * xT[1:2, :]
         + b1_ref[...])
    h = _leaky_relu(h)                                              # (128, tile) f32

    # Layer 2: 128 -> 256 (MXU matmul, weights stored [out, in], bf16 inputs,
    # f32 accumulate).  Bias add / activation kept in f32 (safe on v5e).
    h = jnp.dot(w2_ref[...], h.astype(mxu_dtype),
                preferred_element_type=jnp.float32) + b2_ref[...]
    h = _leaky_relu(h)                                              # (256, tile) f32

    # Layer 3: 256 -> 128.
    h = jnp.dot(w3_ref[...], h.astype(mxu_dtype),
                preferred_element_type=jnp.float32) + b3_ref[...]
    h = _leaky_relu(h)                                              # (128, tile) f32

    # Layer 4: 128 -> 1.  N=1 matmul replaced by VPU multiply + sublane (XLU)
    # reduction; result is already lane-dense (1, tile).
    out = jnp.sum(h * w4_ref[...], axis=0, keepdims=True) + b4_ref[...]
    o_ref[...] = out.astype(o_ref.dtype)                            # (1, tile)


def init_params(key):
    """Deterministic synthetic params matching the nn.Sequential shapes.

    Weights for layers 1-3 are stored in PyTorch layout [out_features, in_features];
    the final layer weight is stored as [in_features, 1] (column) for the sublane
    reduction.  Biases are stored as [out_features, 1] columns (broadcast over lanes).
    """
    dims = [(2, 128), (128, 256), (256, 128), (128, 1)]
    params = []
    for (din, dout) in dims:
        key, kw, kb = jax.random.split(key, 3)
        bound = 1.0 / float(din) ** 0.5          # PyTorch default Linear init range
        if dout == 1:
            w = jax.random.uniform(kw, (din, dout), jnp.float32, -bound, bound)
        else:
            w = jax.random.uniform(kw, (dout, din), jnp.float32, -bound, bound)
        b = jax.random.uniform(kb, (dout, 1), jnp.float32, -bound, bound)
        params += [w, b]
    return tuple(params)


@functools.partial(jax.jit, static_argnames=("tile_n", "use_bf16"))
def discriminator_forward(x, params, tile_n=4096, use_bf16=True):
    """x: [N, 2] float32  ->  [N] float32 (matches .view(-1) of the module)."""
    n = x.shape[0]
    tile = _choose_tile(n, tile_n)
    n_pad = _round_up(n, tile)

    # Transpose FIRST, then pad along the lane (batch) axis -> one fused XLA copy.
    xT = jnp.pad(x.T, ((0, 0), (0, n_pad - n)))                    # (2, n_pad)

    w1, b1, w2, b2, w3, b3, w4, b4 = params
    mxu_dtype = jnp.bfloat16 if use_bf16 else jnp.float32
    kparams = (w1, b1,
               w2.astype(mxu_dtype), b2,
               w3.astype(mxu_dtype), b3,
               w4, b4)

    # Full-array BlockSpecs for the (tiny, VMEM-resident) weights/biases.
    param_specs = [pl.BlockSpec(p.shape, lambda i: (0, 0)) for p in kparams]

    flops = 2 * n_pad * (2 * 128 + 128 * 256 + 256 * 128 + 128)
    bytes_accessed = 12 * n_pad + sum(p.size * p.dtype.itemsize for p in kparams)

    out = pl.pallas_call(
        _disc_kernel,
        out_shape=jax.ShapeDtypeStruct((1, n_pad), jnp.float32),
        grid_spec=pltpu.PrefetchScalarGridSpec(
            num_scalar_prefetch=0,
            grid=(n_pad // tile,),
            in_specs=[pl.BlockSpec((2, tile), lambda i: (0, i))] + param_specs,
            out_specs=pl.BlockSpec((1, tile), lambda i: (0, i)),
        ),
        compiler_params=pltpu.CompilerParams(
            dimension_semantics=("parallel",),
            vmem_limit_bytes=32 * 1024 * 1024,
        ),
        cost_estimate=pl.CostEstimate(
            flops=flops, transcendentals=0, bytes_accessed=bytes_accessed),
    )(xT, *kparams)

    return out[0, :n]


def discriminator_ref(x, params):
    """Pure-JAX f32 reference (same math as the PyTorch module)."""
    w1, b1, w2, b2, w3, b3, w4, b4 = params
    h = _leaky_relu(x @ w1.T + b1.T)
    h = _leaky_relu(h @ w2.T + b2.T)
    h = _leaky_relu(h @ w3.T + b3.T)
    return (h @ w4 + b4.T).reshape(-1)


if __name__ == "__main__":
    key = jax.random.PRNGKey(0)
    kx, kx2, kp = jax.random.split(key, 3)

    params = init_params(kp)

    # Small batch, exact f32 mode -> tight parity with the PyTorch-equivalent math.
    batch = 8
    x = jax.random.normal(kx, (batch, 2), jnp.float32)
    out_f32 = jax.block_until_ready(discriminator_forward(x, params, use_bf16=False))
    ref = discriminator_ref(x, params)
    assert out_f32.shape == (batch,)
    assert jnp.allclose(out_f32, ref, atol=1e-5, rtol=1e-5), (out_f32, ref)

    # Default bf16-MXU fast path: looser tolerance vs the f32 reference.
    out_bf16 = jax.block_until_ready(discriminator_forward(x, params))
    assert out_bf16.shape == (batch,)
    assert jnp.allclose(out_bf16, ref, atol=3e-2, rtol=3e-2), (out_bf16, ref)

    # Larger batch with a small tile override to exercise a multi-step grid.
    batch2 = 512
    x2 = jax.random.normal(kx2, (batch2, 2), jnp.float32)
    out2 = jax.block_until_ready(discriminator_forward(x2, params, tile_n=128))
    ref2 = discriminator_ref(x2, params)
    assert out2.shape == (batch2,)
    assert jnp.allclose(out2, ref2, atol=3e-2, rtol=3e-2)

    print("KERNEL_OK")
</pallas_src>

<mosaic_0001>
module attributes {stable_mosaic.version = 11 : i64} {
  func.func @_disc_kernel(%arg0: i32, %arg1: memref<2x128xf32, #tpu.memory_space<vmem>>, %arg2: memref<128x2xf32, #tpu.memory_space<vmem>>, %arg3: memref<128x1xf32, #tpu.memory_space<vmem>>, %arg4: memref<256x128xf32, #tpu.memory_space<vmem>>, %arg5: memref<256x1xf32, #tpu.memory_space<vmem>>, %arg6: memref<128x256xf32, #tpu.memory_space<vmem>>, %arg7: memref<128x1xf32, #tpu.memory_space<vmem>>, %arg8: memref<128x1xf32, #tpu.memory_space<vmem>>, %arg9: memref<1x1xf32, #tpu.memory_space<vmem>>, %arg10: memref<1x128xf32, #tpu.memory_space<vmem>>) attributes {dimension_semantics = [#tpu.dimension_semantics<parallel>], iteration_bounds = array<i64: 1>, scalar_prefetch = 0 : i64, scratch_operands = 0 : i64, tpu.core_type = #tpu.core_type<tc>, window_params = [{transform_indices = @transform_0, window_bounds = array<i64: 2, 128>}, {pipeline_mode = #tpu.pipeline_mode<synchronous>, transform_indices = @transform_1, window_bounds = array<i64: 128, 2>}, {pipeline_mode = #tpu.pipeline_mode<synchronous>, transform_indices = @transform_2, window_bounds = array<i64: 128, 1>}, {pipeline_mode = #tpu.pipeline_mode<synchronous>, transform_indices = @transform_3, window_bounds = array<i64: 256, 128>}, {pipeline_mode = #tpu.pipeline_mode<synchronous>, transform_indices = @transform_4, window_bounds = array<i64: 256, 1>}, {pipeline_mode = #tpu.pipeline_mode<synchronous>, transform_indices = @transform_5, window_bounds = array<i64: 128, 256>}, {pipeline_mode = #tpu.pipeline_mode<synchronous>, transform_indices = @transform_6, window_bounds = array<i64: 128, 1>}, {pipeline_mode = #tpu.pipeline_mode<synchronous>, transform_indices = @transform_7, window_bounds = array<i64: 128, 1>}, {pipeline_mode = #tpu.pipeline_mode<synchronous>, transform_indices = @transform_8, window_bounds = array<i64: 1, 1>}, {transform_indices = @transform_9, window_bounds = array<i64: 1, 128>}]} {
    %c0 = arith.constant 0 : index
    %c0_0 = arith.constant 0 : index
    %0 = vector.load %arg1[%c0, %c0_0] : memref<2x128xf32, #tpu.memory_space<vmem>>, vector<2x128xf32>
    %c0_1 = arith.constant 0 : index
    %c0_2 = arith.constant 0 : index
    %1 = vector.load %arg2[%c0_1, %c0_2] : memref<128x2xf32, #tpu.memory_space<vmem>>, vector<128x1xf32>
    %2 = vector.extract_strided_slice %0 {offsets = [0, 0], sizes = [1, 128], strides = [1, 1]} : vector<2x128xf32> to vector<1x128xf32>
    %3 = vector.broadcast %1 : vector<128x1xf32> to vector<128x128xf32>
    %4 = vector.broadcast %2 : vector<1x128xf32> to vector<128x128xf32>
    %5 = arith.mulf %3, %4 : vector<128x128xf32>
    %c0_3 = arith.constant 0 : index
    %c1 = arith.constant 1 : index
    %6 = vector.load %arg2[%c0_3, %c1] : memref<128x2xf32, #tpu.memory_space<vmem>>, vector<128x1xf32>
    %7 = vector.extract_strided_slice %0 {offsets = [1, 0], sizes = [1, 128], strides = [1, 1]} : vector<2x128xf32> to vector<1x128xf32>
    %8 = vector.broadcast %6 : vector<128x1xf32> to vector<128x128xf32>
    %9 = vector.broadcast %7 : vector<1x128xf32> to vector<128x128xf32>
    %10 = arith.mulf %8, %9 : vector<128x128xf32>
    %11 = arith.addf %5, %10 : vector<128x128xf32>
    %c0_4 = arith.constant 0 : index
    %c0_5 = arith.constant 0 : index
    %12 = vector.load %arg3[%c0_4, %c0_5] : memref<128x1xf32, #tpu.memory_space<vmem>>, vector<128x1xf32>
    %13 = vector.broadcast %12 : vector<128x1xf32> to vector<128x128xf32>
    %14 = arith.addf %11, %13 : vector<128x128xf32>
    %cst = arith.constant 0.00999999977 : f32
    %15 = vector.broadcast %cst : f32 to vector<128x128xf32>
    %16 = arith.mulf %15, %14 : vector<128x128xf32>
    %17 = arith.maximumf %14, %16 : vector<128x128xf32>
    %c0_6 = arith.constant 0 : index
    %c0_7 = arith.constant 0 : index
    %18 = vector.load %arg4[%c0_6, %c0_7] : memref<256x128xf32, #tpu.memory_space<vmem>>, vector<256x128xf32>
    %cst_8 = arith.constant dense<0.000000e+00> : vector<256x128xf32>
    %19 = tpu.matmul %18, %17, %cst_8 {dimension_numbers = #tpu.dot_dimension_numbers<[1], [0], [0], [1], [0, 0, 1, 1], [], []>} : vector<256x128xf32>, vector<128x128xf32>, vector<256x128xf32> -> vector<256x128xf32>
    %c0_9 = arith.constant 0 : index
    %c0_10 = arith.constant 0 : index
    %20 = vector.load %arg5[%c0_9, %c0_10] : memref<256x1xf32, #tpu.memory_space<vmem>>, vector<256x1xf32>
    %21 = vector.broadcast %20 : vector<256x1xf32> to vector<256x128xf32>
    %22 = arith.addf %19, %21 : vector<256x128xf32>
    %cst_11 = arith.constant 0.00999999977 : f32
    %23 = vector.broadcast %cst_11 : f32 to vector<256x128xf32>
    %24 = arith.mulf %23, %22 : vector<256x128xf32>
    %25 = arith.maximumf %22, %24 : vector<256x128xf32>
    %c0_12 = arith.constant 0 : index
    %c0_13 = arith.constant 0 : index
    %26 = vector.load %arg6[%c0_12, %c0_13] : memref<128x256xf32, #tpu.memory_space<vmem>>, vector<128x256xf32>
    %cst_14 = arith.constant dense<0.000000e+00> : vector<128x128xf32>
    %27 = tpu.matmul %26, %25, %cst_14 {dimension_numbers = #tpu.dot_dimension_numbers<[1], [0], [0], [1], [0, 0, 1, 1], [], []>} : vector<128x256xf32>, vector<256x128xf32>, vector<128x128xf32> -> vector<128x128xf32>
    %c0_15 = arith.constant 0 : index
    %c0_16 = arith.constant 0 : index
    %28 = vector.load %arg7[%c0_15, %c0_16] : memref<128x1xf32, #tpu.memory_space<vmem>>, vector<128x1xf32>
    %29 = vector.broadcast %28 : vector<128x1xf32> to vector<128x128xf32>
    %30 = arith.addf %27, %29 : vector<128x128xf32>
    %cst_17 = arith.constant 0.00999999977 : f32
    %31 = vector.broadcast %cst_17 : f32 to vector<128x128xf32>
    %32 = arith.mulf %31, %30 : vector<128x128xf32>
    %33 = arith.maximumf %30, %32 : vector<128x128xf32>
    %c0_18 = arith.constant 0 : index
    %c0_19 = arith.constant 0 : index
    %34 = vector.load %arg8[%c0_18, %c0_19] : memref<128x1xf32, #tpu.memory_space<vmem>>, vector<128x1xf32>
    %35 = vector.broadcast %34 : vector<128x1xf32> to vector<128x128xf32>
    %36 = arith.mulf %33, %35 : vector<128x128xf32>
    %cst_20 = arith.constant dense<0.000000e+00> : vector<128xf32>
    %37 = vector.multi_reduction <add>, %36, %cst_20 [0] : vector<128x128xf32> to vector<128xf32>
    %38 = vector.shape_cast %37 : vector<128xf32> to vector<1x128xf32>
    %c0_21 = arith.constant 0 : index
    %c0_22 = arith.constant 0 : index
    %39 = vector.load %arg9[%c0_21, %c0_22] : memref<1x1xf32, #tpu.memory_space<vmem>>, vector<1x1xf32>
    %40 = vector.broadcast %39 : vector<1x1xf32> to vector<1x128xf32>
    %41 = arith.addf %38, %40 : vector<1x128xf32>
    %c0_23 = arith.constant 0 : index
    %c0_24 = arith.constant 0 : index
    %42 = vector.load %arg10[%c0_23, %c0_24] : memref<1x128xf32, #tpu.memory_space<vmem>>, vector<1x128xf32>
    tpu.vector_store %arg10[%c0_23, %c0_24], %41 {strides = array<i32>} : memref<1x128xf32, #tpu.memory_space<vmem>>, vector<1x128xf32>,
    return
  }
  func.func @transform_0(%arg0: i32) -> (i32, i32) {
    %c0_i32 = arith.constant 0 : i32
    %c0_i32_0 = arith.constant 0 : i32
    return %c0_i32, %arg0 : i32, i32
  }
  func.func @transform_1(%arg0: i32) -> (i32, i32) {
    %c0_i32 = arith.constant 0 : i32
    %c0_i32_0 = arith.constant 0 : i32
    %c0_i32_1 = arith.constant 0 : i32
    return %c0_i32, %c0_i32_0 : i32, i32
  }
  func.func @transform_2(%arg0: i32) -> (i32, i32) {
    %c0_i32 = arith.constant 0 : i32
    %c0_i32_0 = arith.constant 0 : i32
    %c0_i32_1 = arith.constant 0 : i32
    return %c0_i32, %c0_i32_0 : i32, i32
  }
  func.func @transform_3(%arg0: i32) -> (i32, i32) {
    %c0_i32 = arith.constant 0 : i32
    %c0_i32_0 = arith.constant 0 : i32
    %c0_i32_1 = arith.constant 0 : i32
    return %c0_i32, %c0_i32_0 : i32, i32
  }
  func.func @transform_4(%arg0: i32) -> (i32, i32) {
    %c0_i32 = arith.constant 0 : i32
    %c0_i32_0 = arith.constant 0 : i32
    %c0_i32_1 = arith.constant 0 : i32
    return %c0_i32, %c0_i32_0 : i32, i32
  }
  func.func @transform_5(%arg0: i32) -> (i32, i32) {
    %c0_i32 = arith.constant 0 : i32
    %c0_i32_0 = arith.constant 0 : i32
    %c0_i32_1 = arith.constant 0 : i32
    return %c0_i32, %c0_i32_0 : i32, i32
  }
  func.func @transform_6(%arg0: i32) -> (i32, i32) {
    %c0_i32 = arith.constant 0 : i32
    %c0_i32_0 = arith.constant 0 : i32
    %c0_i32_1 = arith.constant 0 : i32
    return %c0_i32, %c0_i32_0 : i32, i32
  }
  func.func @transform_7(%arg0: i32) -> (i32, i32) {
    %c0_i32 = arith.constant 0 : i32
    %c0_i32_0 = arith.constant 0 : i32
    %c0_i32_1 = arith.constant 0 : i32
    return %c0_i32, %c0_i32_0 : i32, i32
  }
  func.func @transform_8(%arg0: i32) -> (i32, i32) {
    %c0_i32 = arith.constant 0 : i32
    %c0_i32_0 = arith.constant 0 : i32
    %c0_i32_1 = arith.constant 0 : i32
    return %c0_i32, %c0_i32_0 : i32, i32
  }
  func.func @transform_9(%arg0: i32) -> (i32, i32) {
    %c0_i32 = arith.constant 0 : i32
    %c0_i32_0 = arith.constant 0 : i32
    return %c0_i32, %arg0 : i32, i32
  }
}

</mosaic_0001>

<bundles_post_ra>
// kernel: discriminator_forward.1
= control target key start
LH: loop header
LB: loop body
LE: loop exit
PB: predicated region body
PF: predicated region fallthrough
CT: control target
= control target key end

     0   :  { %v1259_v0 = vmov 0   ;;  %v1260_v9 = vmov 1   ;;  %s2022_s1 = inlined_call_operand.vmem [shape: f32[128,2], index: 1, kind: input, shape index: {}]   ;;  %s2023_s2 = inlined_call_operand.vmem [shape: f32[128,1], index: 2, kind: input, shape index: {}]   ;;  %s2024_s4 = inlined_call_operand.vmem [shape: f32[256,1], index: 4, kind: input, shape index: {}]   ;;  %s2025_s0 = inlined_call_operand.vmem [shape: f32[2,128], index: 0, kind: input, shape index: {}]   ;;  %s2026_s6 = inlined_call_operand.vmem [shape: f32[128,1], index: 6, kind: input, shape index: {}]   ;;  %s2027_s7 = inlined_call_operand.vmem [shape: f32[128,1], index: 7, kind: input, shape index: {}]   ;;  %s2028_s3 = inlined_call_operand.vmem [shape: f32[256,128], index: 3, kind: input, shape index: {}]   ;;  %s2029_s8 = inlined_call_operand.<no memory space> [shape: f32[1,1], index: 8, kind: input, shape index: {}]   ;;  %s2030_s5 = inlined_call_operand.vmem [shape: f32[128,256], index: 5, kind: input, shape index: {}]   ;;  %s2031_s9 = inlined_call_operand.vmem [shape: f32[1,128], index: 9, kind: output, shape index: {}]  }
   0x1   :  { %1246 = vset.pattern.permute.xlu2 %v1259_v0  ;;  %1245 = vset.pattern.permute.xlu1 %v1259_v0  ;;  %v1316_v1 = vld [vmem:[%s2022_s1 + $0x20] sm:$0xff]  ;;  %v1321_v2 = vld [vmem:[%s2022_s1 + $0x10] sm:$0xff]  ;;  %v40_v4 = vld [vmem:[%s2022_s1 + $0x28] sm:$0xff] }
   0x2   :  { %v1326_v3 = vld [vmem:[%s2022_s1] sm:$0xff]  ;;  %1244 = vset.pattern.permute.xlu0 %v1259_v0  ;;  %73 = vperm.xlu2 %1246, %v1316_v1   ;;  %v1338_v5 = vld [vmem:[%s2022_s1 + $0x18] sm:$0xff]  ;;  %v1343_v6 = vld [vmem:[%s2022_s1 + $0x8] sm:$0xff] }
   0x3   :  { %63 = vperm.xlu1 %1245, %v1321_v2   ;;  %53 = vperm.xlu0 %1244, %v1326_v3   ;;  %v49_v7 = vld [vmem:[%s2022_s1 + $0x70] sm:$0xff]  ;;  %v50_v8 = vld [vmem:[%s2022_s1 + $0x78] sm:$0xff]  ;;  %v48_v11 = vld [vmem:[%s2022_s1 + $0x68] sm:$0xff] }
   0x4   :  { %v252_v10 = vld [vmem:[%s2023_s2 + $0x38] sm:$0xff]  ;;  %v47_v12 = vld [vmem:[%s2022_s1 + $0x60] sm:$0xff]  ;;  %v259_v15 = vld [vmem:[%s2023_s2 + $0x70] sm:$0xff] }
   0x5   :  { %v260_v13 = vld [vmem:[%s2023_s2 + $0x78] sm:$0xff]  ;;  %v45_v16 = vld [vmem:[%s2022_s1 + $0x50] sm:$0xff]  ;;  %v258_v17 = vld [vmem:[%s2023_s2 + $0x68] sm:$0xff] }
   0x6   :  { %v46_v14 = vld [vmem:[%s2022_s1 + $0x58] sm:$0xff]  ;;  %v44_v18 = vld [vmem:[%s2022_s1 + $0x48] sm:$0xff]  ;;  %v257_v19 = vld [vmem:[%s2023_s2 + $0x60] sm:$0xff] }
   0x7   :  { %v43_v20 = vld [vmem:[%s2022_s1 + $0x40] sm:$0xff]  ;;  %v256_v21 = vld [vmem:[%s2023_s2 + $0x58] sm:$0xff]  ;;  %v255_v23 = vld [vmem:[%s2023_s2 + $0x50] sm:$0xff] }
   0x8   :  { %v42_v22 = vld [vmem:[%s2022_s1 + $0x38] sm:$0xff]  ;;  %v41_v24 = vld [vmem:[%s2022_s1 + $0x30] sm:$0xff]  ;;  %v254_v25 = vld [vmem:[%s2023_s2 + $0x48] sm:$0xff] }
   0x9   :  { %v253_v26 = vld [vmem:[%s2023_s2 + $0x40] sm:$0xff]  ;;  %v251_v28 = vld [vmem:[%s2023_s2 + $0x30] sm:$0xff]  ;;  %v250_v31 = vld [vmem:[%s2023_s2 + $0x28] sm:$0xff] }
   0xa   :  { %78 = vperm.xlu2 %1246, %v40_v4   ;;  %v247_v30 = vld [vmem:[%s2023_s2 + $0x10] sm:$0xff]  ;;  %v249_v34 = vld [vmem:[%s2023_s2 + $0x20] sm:$0xff]  ;;  %v426_v38 = vld [vmem:[%s2024_s4 + $0x28] sm:$0xff] }
   0xb   :  { %68 = vperm.xlu1 %1245, %v1338_v5   ;;  %58 = vperm.xlu0 %1244, %v1343_v6   ;;  %v423_v33 = vld [vmem:[%s2024_s4 + $0x10] sm:$0xff]  ;;  %v248_v39 = vld [vmem:[%s2023_s2 + $0x18] sm:$0xff]  ;;  %v246_v44 = vld [vmem:[%s2023_s2 + $0x8] sm:$0xff] }
   0xc   :  { %v451_v43 = vld [vmem:[%s2024_s4 + $0xf0] sm:$0xff]  ;;  %v245_v46 = vld [vmem:[%s2023_s2] sm:$0xff]  ;;  %v422_v53 = vld [vmem:[%s2024_s4 + $0x8] sm:$0xff] }
   0xd   :  { %v435_v49 = vld [vmem:[%s2024_s4 + $0x70] sm:$0xff]  ;;  %v421_v50 = vld [vmem:[%s2024_s4] sm:$0xff]  ;;  %v448_v60 = vld [vmem:[%s2024_s4 + $0xd8] sm:$0xff] }
   0xe   :  { %v34_v51 = vld [vmem:[%s2025_s0] sm:$0x3]  ;;  %v424_v61 = vld [vmem:[%s2024_s4 + $0x18] sm:$0xff] }
   0xf   :  { %v1483_v54 = vperm.slane %v34_v51, 1  ;;  %v1487_v57 = vperm.slane %v34_v51, 0  ;;  %v425_v62 = vld [vmem:[%s2024_s4 + $0x20] sm:$0xff] }
  0x12   :  { %123 = vperm.xlu2 %1246, %v49_v7  }
  0x13   :  { %1247 = vset.pattern.permute.xlu1 %v1260_v9  ;;  %128 = vperm.xlu0 %1244, %v50_v8  }
  0x14   :  { %209 = vperm.xlu1 %1247, %v50_v8  }
  0x1a   :  { %1249 = vset.pattern.permute.xlu2 %v1260_v9 }
  0x1b   :  { %298 = vperm.xlu0 %1244, %v252_v10   ;;  %201 = vperm.xlu2 %1249, %v48_v11   ;;  %v452_v10 = vld [vmem:[%s2024_s4 + $0xf8] sm:$0xff] }
  0x1c   :  { %1248 = vset.pattern.permute.xlu1 %v1259_v0 }
  0x1d   :  { %118 = vperm.xlu1 %1248, %v48_v11  }
  0x23   :  { %1252 = vset.pattern.permute.xlu0 %v1260_v9  ;;  %1250 = vset.pattern.permute.xlu2 %v1259_v0 }
  0x24   :  { %205 = vperm.xlu0 %1252, %v49_v7   ;;  %113 = vperm.xlu2 %1250, %v47_v12  }
  0x25   :  { %338 = vperm.xlu1 %1248, %v260_v13  }
  0x2c   :  { %197 = vperm.xlu0 %1252, %v47_v12   ;;  %108 = vperm.xlu2 %1250, %v46_v14  }
  0x2d   :  { %333 = vperm.xlu1 %1248, %v259_v15  }
  0x34   :  { %193 = vperm.xlu0 %1252, %v46_v14   ;;  %103 = vperm.xlu2 %1250, %v45_v16  }
  0x35   :  { %328 = vperm.xlu1 %1248, %v258_v17  }
  0x3c   :  { %189 = vperm.xlu0 %1252, %v45_v16   ;;  %98 = vperm.xlu2 %1250, %v44_v18  }
  0x3d   :  { %323 = vperm.xlu1 %1248, %v257_v19   ;;  %v445_v19 = vld [vmem:[%s2024_s4 + $0xc0] sm:$0xff] }
  0x44   :  { %185 = vperm.xlu0 %1252, %v44_v18   ;;  %93 = vperm.xlu2 %1250, %v43_v20  }
  0x45   :  { %318 = vperm.xlu1 %1248, %v256_v21   ;;  %v436_v21 = vld [vmem:[%s2024_s4 + $0x78] sm:$0xff] }
  0x4c   :  { %181 = vperm.xlu0 %1252, %v43_v20   ;;  %88 = vperm.xlu2 %1250, %v42_v22  }
  0x4d   :  { %313 = vperm.xlu1 %1248, %v255_v23  }
  0x54   :  { %177 = vperm.xlu0 %1252, %v42_v22   ;;  %83 = vperm.xlu2 %1250, %v41_v24   ;;  %v450_v22 = vld [vmem:[%s2024_s4 + $0xe8] sm:$0xff] }
  0x55   :  { %308 = vperm.xlu1 %1248, %v254_v25  }
  0x5c   :  { %173 = vperm.xlu0 %1252, %v41_v24   ;;  %1251 = vset.pattern.permute.xlu2 %v1260_v9  ;;  %v1410_v27 = vpop.permute.xlu2 %73 }
  0x5d   :  { %303 = vperm.xlu1 %1248, %v253_v26   ;;  %169 = vperm.xlu2 %1251, %v40_v4  }
  0x64   :  { %157 = vperm.xlu0 %1252, %v1321_v2   ;;  %v1416_v29 = vpop.permute.xlu2 %78 }
  0x65   :  { %1253 = vset.pattern.permute.xlu1 %v1260_v9  ;;  %1254 = vset.pattern.permute.xlu2 %v1259_v0 }
  0x66   :  { %165 = vperm.xlu1 %1253, %v1316_v1   ;;  %293 = vperm.xlu2 %1254, %v251_v28  }
  0x6c   :  { %1257 = vset.pattern.permute.xlu0 %v1259_v0  ;;  %v124_v32 = vpop.permute.xlu2 %123 }
  0x6d   :  { %273 = vperm.xlu0 %1257, %v247_v30   ;;  %v146_v7 = vmul.f32 %v1487_v57, %v124_v32  ;;  %v429_v32 = vld [vmem:[%s2024_s4 + $0x40] sm:$0xff] }
  0x6e   :  { %161 = vperm.xlu1 %1253, %v1338_v5   ;;  %288 = vperm.xlu2 %1254, %v250_v31  }
  0x75   :  { %v1435_v35 = vpop.permute.xlu1 %63  ;;  %465 = vperm.xlu0 %1257, %v423_v33   ;;  %v1437_v36 = vpop.permute.xlu0 %53 }
  0x76   :  { %1255 = vset.pattern.permute.xlu1 %v1259_v0  ;;  %1256 = vset.pattern.permute.xlu2 %v1260_v9  ;;  %v1441_v37 = vpop.permute.xlu2 %201  ;;  %v427_v9 = vld [vmem:[%s2024_s4 + $0x30] sm:$0xff] }
  0x77   :  { %283 = vperm.xlu1 %1255, %v249_v34   ;;  %153 = vperm.xlu2 %1256, %v1343_v6   ;;  %v432_v6 = vld [vmem:[%s2024_s4 + $0x58] sm:$0xff]  ;;  %v226_v16 = vmul.f32 %v1483_v54, %v1441_v37  ;;  %v449_v37 = vld [vmem:[%s2024_s4 + $0xe0] sm:$0xff] }
  0x7d   :  { %v1450_v40 = vpop.permute.xlu1 %68  ;;  %480 = vperm.xlu0 %1257, %v426_v38   ;;  %v1452_v41 = vpop.permute.xlu0 %58  ;;  %v434_v38 = vld [vmem:[%s2024_s4 + $0x68] sm:$0xff] }
  0x7e   :  { %v1454_v42 = vpop.permute.xlu2 %113 }
  0x7f   :  { %278 = vperm.xlu1 %1255, %v248_v39   ;;  %149 = vperm.xlu2 %1256, %v1326_v3   ;;  %v144_v33 = vmul.f32 %v1487_v57, %v1454_v42 }
  0x85   :  { %605 = vperm.xlu0 %1257, %v451_v43   ;;  %v129_v45 = vpop.permute.xlu0 %128 }
  0x86   :  { %v210_v47 = vpop.permute.xlu1 %209  ;;  %v1466_v48 = vpop.permute.xlu2 %108  ;;  %v147_v58 = vmul.f32 %v1487_v57, %v129_v45 }
  0x87   :  { %268 = vperm.xlu1 %1255, %v246_v44   ;;  %1258 = vset.pattern.permute.xlu2 %v1259_v0  ;;  %v228_v59 = vmul.f32 %v1483_v54, %v210_v47 }
  0x88   :  { %263 = vperm.xlu2 %1258, %v245_v46  }
  0x89   :  { %v244_v1 = vadd.f32 %v228_v59, %v147_v58 }
  0x8d   :  { %525 = vperm.xlu0 %1257, %v435_v49   ;;  %v1478_v52 = vpop.permute.xlu0 %298  ;;  %v442_v49 = vld [vmem:[%s2024_s4 + $0xa8] sm:$0xff] }
  0x8e   :  { %v1485_v55 = vpop.permute.xlu2 %103 }
  0x8f   :  { %455 = vperm.xlu1 %1255, %v421_v50   ;;  %v119_v56 = vpop.permute.xlu1 %118  ;;  %v143_v50 = vmul.f32 %v1487_v57, %v1466_v48 }
  0x90   :  { %460 = vperm.xlu2 %1258, %v422_v53   ;;  %v145_v17 = vmul.f32 %v1487_v57, %v119_v56  ;;  %v433_v53 = vld [vmem:[%s2024_s4 + $0x60] sm:$0xff]  ;;  %v447_v56 = vld [vmem:[%s2024_s4 + $0xd0] sm:$0xff] }
  0x92   :  { %v242_v24 = vadd.f32 %v226_v16, %v145_v17  ;;  %v444_v17 = vld [vmem:[%s2024_s4 + $0xb8] sm:$0xff] }
  0x95   :  { %590 = vperm.xlu0 %1257, %v448_v60  }
  0x96   :  { %v206_v63 = vpop.permute.xlu0 %205  ;;  %v1500_v0 = vpop.permute.xlu2 %98 }
  0x97   :  { %470 = vperm.xlu1 %1255, %v424_v61   ;;  %v339_v2 = vpop.permute.xlu1 %338  ;;  %v227_v4 = vmul.f32 %v1483_v54, %v206_v63  ;;  %v439_v63 = vld [vmem:[%s2024_s4 + $0x90] sm:$0xff] }
  0x98   :  { %v356_v3 = vadd.f32 %v339_v2, %v244_v1  ;;  %475 = vperm.xlu2 %1258, %v425_v62   ;;  %v142_v2 = vmul.f32 %v1487_v57, %v1485_v55 }
  0x99   :  { %v243_v13 = vadd.f32 %v227_v4, %v146_v7  ;;  %v446_v4 = vld [vmem:[%s2024_s4 + $0xc8] sm:$0xff] }
  0x9a   :  { %v372_v5 = vmul.f32 0.01, %v356_v3 }
  0x9c   :  { %v388_v8 = vmax.f32 %v356_v3, %v372_v5  ;;  %v431_v5 = vld [vmem:[%s2024_s4 + $0x50] sm:$0xff] }
  0x9d   :  { %510 = vperm.xlu0 %1257, %v432_v6  }
  0x9e   :  { %v198_v11 = vpop.permute.xlu0 %197  ;;  %613 = vmatpush.msra.mxu0 %v388_v8  ;;  %1226 = vmatpush.msra.mxu3 %v388_v8  ;;  %v1513_v12 = vpop.permute.xlu2 %93 }
  0x9f   :  { %485 = vperm.xlu1 %1255, %v427_v9   ;;  %v334_v14 = vpop.permute.xlu1 %333  ;;  %v225_v30 = vmul.f32 %v1483_v54, %v198_v11  ;;  %v822_v11 = vld [vmem:[%s2026_s6] sm:$0xff] }
  0xa0   :  { %v355_v15 = vadd.f32 %v334_v14, %v243_v13  ;;  %610 = vperm.xlu2 %1258, %v452_v10   ;;  %v141_v13 = vmul.f32 %v1487_v57, %v1500_v0 }
  0xa1   :  { %v241_v43 = vadd.f32 %v225_v30, %v144_v33  ;;  %v140_v30 = vmul.f32 %v1487_v57, %v1513_v12  ;;  %v428_v33 = vld [vmem:[%s2024_s4 + $0x38] sm:$0xff] }
  0xa2   :  { %v371_v18 = vmul.f32 0.01, %v355_v15 }
  0xa4   :  { %v387_v20 = vmax.f32 %v355_v15, %v371_v18  ;;  %v430_v15 = vld [vmem:[%s2024_s4 + $0x48] sm:$0xff] }
  0xa5   :  { %575 = vperm.xlu0 %1257, %v445_v19  }
  0xa6   :  { %v194_v23 = vpop.permute.xlu0 %193  ;;  %614 = vmatpush.msra.mxu0 %v387_v20  ;;  %1227 = vmatpush.msra.mxu3 %v387_v20  ;;  %v1527_v25 = vpop.permute.xlu2 %88 }
  0xa7   :  { %530 = vperm.xlu1 %1255, %v436_v21   ;;  %v329_v26 = vpop.permute.xlu1 %328  ;;  %v224_v42 = vmul.f32 %v1483_v54, %v194_v23  ;;  %v139_v0 = vmul.f32 %v1487_v57, %v1527_v25  ;;  %v443_v25 = vld [vmem:[%s2024_s4 + $0xb0] sm:$0xff] }
  0xa8   :  { %v354_v28 = vadd.f32 %v329_v26, %v242_v24  ;;  %600 = vperm.xlu2 %1258, %v450_v22  }
  0xa9   :  { %v240_v59 = vadd.f32 %v224_v42, %v143_v50 }
  0xaa   :  { %v370_v31 = vmul.f32 0.01, %v354_v28 }
  0xac   :  { %v386_v34 = vmax.f32 %v354_v28, %v370_v31  ;;  %v825_v28 = vld [vmem:[%s2026_s6 + $0x18] sm:$0xff] }
  0xad   :  { %495 = vperm.xlu0 %1257, %v429_v32  }
  0xae   :  { %v190_v39 = vpop.permute.xlu0 %189  ;;  %615 = vmatpush.msra.mxu0 %v386_v34  ;;  %1228 = vmatpush.msra.mxu3 %v386_v34  ;;  %v1541_v46 = vpop.permute.xlu2 %83  ;;  %v137_v34 = vmul.f32 %v1487_v57, %v1416_v29 }
  0xaf   :  { %595 = vperm.xlu1 %1255, %v449_v37   ;;  %v324_v44 = vpop.permute.xlu1 %323  ;;  %v223_v48 = vmul.f32 %v1483_v54, %v190_v39  ;;  %v138_v39 = vmul.f32 %v1487_v57, %v1541_v46  ;;  %v441_v46 = vld [vmem:[%s2024_s4 + $0xa0] sm:$0xff] }
  0xb0   :  { %v353_v45 = vadd.f32 %v324_v44, %v241_v43  ;;  %520 = vperm.xlu2 %1258, %v434_v38  }
  0xb1   :  { %v239_v7 = vadd.f32 %v223_v48, %v142_v2  ;;  %v438_v2 = vld [vmem:[%s2024_s4 + $0x88] sm:$0xff] }
  0xb2   :  { %v369_v47 = vmul.f32 0.01, %v353_v45 }
  0xb4   :  { %v385_v51 = vmax.f32 %v353_v45, %v369_v47 }
  0xb5   :  { %560 = vperm.xlu0 %1257, %v442_v49  }
  0xb6   :  { %v186_v58 = vpop.permute.xlu0 %185  ;;  %616 = vmatpush.msra.mxu0 %v385_v51  ;;  %1229 = vmatpush.msra.mxu3 %v385_v51  ;;  %v828_v51 = vld [vmem:[%s2026_s6 + $0x30] sm:$0xff] }
  0xb7   :  { %515 = vperm.xlu1 %1255, %v433_v53   ;;  %v319_v60 = vpop.permute.xlu1 %318  ;;  %v170_v1 = vpop.permute.xlu2 %169  ;;  %v222_v55 = vmul.f32 %v1483_v54, %v186_v58 }
  0xb8   :  { %v352_v61 = vadd.f32 %v319_v60, %v240_v59  ;;  %585 = vperm.xlu2 %1258, %v447_v56   ;;  %v218_v31 = vmul.f32 %v1483_v54, %v170_v1  ;;  %v831_v1 = vld [vmem:[%s2026_s6 + $0x48] sm:$0xff] }
  0xb9   :  { %v238_v19 = vadd.f32 %v222_v55, %v141_v13  ;;  %v136_v55 = vmul.f32 %v1487_v57, %v1410_v27 }
  0xba   :  { %v368_v62 = vmul.f32 0.01, %v352_v61  ;;  %v234_v42 = vadd.f32 %v218_v31, %v137_v34 }
  0xbc   :  { %v384_v3 = vmax.f32 %v352_v61, %v368_v62  ;;  %v440_v61 = vld [vmem:[%s2024_s4 + $0x98] sm:$0xff] }
  0xbd   :  { %545 = vperm.xlu0 %1257, %v439_v63  }
  0xbe   :  { %v182_v6 = vpop.permute.xlu0 %181  ;;  %617 = vmatpush.msra.mxu0 %v384_v3  ;;  %1230 = vmatpush.msra.mxu3 %v384_v3  ;;  %v437_v3 = vld [vmem:[%s2024_s4 + $0x80] sm:$0xff] }
  0xbf   :  { %580 = vperm.xlu1 %1255, %v446_v4   ;;  %v314_v8 = vpop.permute.xlu1 %313  ;;  %v221_v23 = vmul.f32 %v1483_v54, %v182_v6  ;;  %v834_v6 = vld [vmem:[%s2026_s6 + $0x60] sm:$0xff] }
  0xc0   :  { %v351_v9 = vadd.f32 %v314_v8, %v239_v7  ;;  %505 = vperm.xlu2 %1258, %v431_v5   ;;  %v294_v16 = vpop.permute.xlu2 %293 }
  0xc1   :  { %v237_v38 = vadd.f32 %v221_v23, %v140_v30 }
  0xc2   :  { %v367_v10 = vmul.f32 0.01, %v351_v9 }
  0xc4   :  { %v383_v14 = vmax.f32 %v351_v9, %v367_v10  ;;  %v823_v9 = vld [vmem:[%s2026_s6 + $0x8] sm:$0xff]  ;;  %v824_v10 = vld [vmem:[%s2026_s6 + $0x10] sm:$0xff] }
  0xc5   :  { %840 = vperm.xlu0 %1257, %v822_v11  }
  0xc6   :  { %v178_v18 = vpop.permute.xlu0 %177  ;;  %618 = vmatpush.msra.mxu0 %v383_v14  ;;  %1231 = vmatpush.msra.mxu3 %v383_v14 }
  0xc7   :  { %v220_v20 = vmul.f32 %v1483_v54, %v178_v18  ;;  %500 = vperm.xlu1 %1255, %v430_v15   ;;  %v309_v21 = vpop.permute.xlu1 %308  ;;  %v134_v18 = vmul.f32 %v1487_v57, %v1435_v35 }
  0xc8   :  { %v350_v22 = vadd.f32 %v309_v21, %v238_v19  ;;  %570 = vperm.xlu2 %1258, %v444_v17   ;;  %v289_v43 = vpop.permute.xlu2 %288 }
  0xc9   :  { %v236_v24 = vadd.f32 %v220_v20, %v139_v0  ;;  %v346_v50 = vadd.f32 %v289_v43, %v234_v42  ;;  %v826_v20 = vld [vmem:[%s2026_s6 + $0x20] sm:$0xff]  ;;  %v135_v0 = vmul.f32 %v1487_v57, %v1450_v40  ;;  %v1082_v40 = vld [vmem:[%s2027_s7 + $0x10] sm:$0xff] }
  0xca   :  { %v366_v26 = vmul.f32 0.01, %v350_v22 }
  0xcb   :  { %v348_v12 = vadd.f32 %v1478_v52, %v236_v24  ;;  %v362_v59 = vmul.f32 0.01, %v346_v50  ;;  %v827_v24 = vld [vmem:[%s2026_s6 + $0x28] sm:$0xff] }
  0xcc   :  { %v382_v32 = vmax.f32 %v350_v22, %v366_v26 }
  0xcd   :  { %855 = vperm.xlu0 %1257, %v825_v28   ;;  %v364_v53 = vmul.f32 0.01, %v348_v12  ;;  %v378_v63 = vmax.f32 %v346_v50, %v362_v59  ;;  %v832_v50 = vld [vmem:[%s2026_s6 + $0x50] sm:$0xff] }
  0xce   :  { %v174_v37 = vpop.permute.xlu0 %173  ;;  %619 = vmatpush.msra.mxu0 %v382_v32  ;;  %1232 = vmatpush.msra.mxu3 %v382_v32  ;;  %v132_v32 = vmul.f32 %v1487_v57, %v1437_v36  ;;  %v836_v59 = vld [vmem:[%s2026_s6 + $0x70] sm:$0xff] }
  0xcf   :  { %v219_v44 = vmul.f32 %v1483_v54, %v174_v37  ;;  %565 = vperm.xlu1 %1255, %v443_v25   ;;  %v304_v45 = vpop.permute.xlu1 %303  ;;  %v380_v60 = vmax.f32 %v348_v12, %v364_v53  ;;  %v829_v37 = vld [vmem:[%s2026_s6 + $0x38] sm:$0xff]  ;;  %v133_v12 = vmul.f32 %v1487_v57, %v1452_v41  ;;  %v1085_v41 = vld [vmem:[%s2027_s7 + $0x28] sm:$0xff] }
  0xd0   :  { %v349_v47 = vadd.f32 %v304_v45, %v237_v38  ;;  %490 = vperm.xlu2 %1258, %v428_v33  }
  0xd1   :  { %v235_v49 = vadd.f32 %v219_v44, %v138_v39  ;;  %v154_v5 = vpop.permute.xlu2 %153  ;;  %v830_v44 = vld [vmem:[%s2026_s6 + $0x40] sm:$0xff] }
  0xd2   :  { %v365_v29 = vmul.f32 0.01, %v349_v47  ;;  %v214_v25 = vmul.f32 %v1483_v54, %v154_v5  ;;  %v1083_v5 = vld [vmem:[%s2027_s7 + $0x18] sm:$0xff] }
  0xd3   :  { %v347_v52 = vadd.f32 %v294_v16, %v235_v49  ;;  %v837_v16 = vld [vmem:[%s2026_s6 + $0x78] sm:$0xff] }
  0xd4   :  { %v381_v56 = vmax.f32 %v349_v47, %v365_v29 }
  0xd5   :  { %870 = vperm.xlu0 %1257, %v828_v51   ;;  %v363_v58 = vmul.f32 0.01, %v347_v52  ;;  %v833_v51 = vld [vmem:[%s2026_s6 + $0x58] sm:$0xff] }
  0xd6   :  { %620 = vmatpush.msra.mxu0 %v381_v56  ;;  %1233 = vmatpush.msra.mxu3 %v381_v56  ;;  %v158_v7 = vpop.permute.xlu0 %157  ;;  %v405_v56 = vld [vmem:[%s2028_s3 + $0x80] sm:$0xff] }
  0xd7   :  { %555 = vperm.xlu1 %1255, %v441_v46   ;;  %v379_v48 = vmax.f32 %v347_v52, %v363_v58  ;;  %v215_v14 = vmul.f32 %v1483_v54, %v158_v7  ;;  %v389_v52 = vld [vmem:[%s2028_s3] sm:$0xff]  ;;  %v835_v58 = vld [vmem:[%s2026_s6 + $0x68] sm:$0xff]  ;;  %v392_v7 = vld [vmem:[%s2028_s3 + $0x18] sm:$0xff] }
  0xd8   :  { %v166_v62 = vpop.permute.xlu1 %165  ;;  %621 = vmatpush.msra.mxu0 %v380_v60  ;;  %1234 = vmatpush.msra.mxu3 %v380_v60  ;;  %v1088_v46 = vld [vmem:[%s2027_s7 + $0x40] sm:$0xff]  ;;  %v390_v60 = vld [vmem:[%s2028_s3 + $0x8] sm:$0xff] }
  0xd9   :  { %550 = vperm.xlu2 %1258, %v440_v61   ;;  %v217_v8 = vmul.f32 %v1483_v54, %v166_v62  ;;  %v150_v17 = vpop.permute.xlu2 %149  ;;  %v231_v22 = vadd.f32 %v215_v14, %v134_v18  ;;  %v406_v61 = vld [vmem:[%s2028_s3 + $0x88] sm:$0xff]  ;;  %v1080_v62 = vld [vmem:[%s2027_s7] sm:$0xff]  ;;  %v1090_v14 = vld [vmem:[%s2027_s7 + $0x50] sm:$0xff] }
  0xda   :  { %622 = vmatpush.msra.mxu0 %v379_v48  ;;  %1235 = vmatpush.msra.mxu3 %v379_v48  ;;  %v213_v30 = vmul.f32 %v1483_v54, %v150_v17  ;;  %v1091_v48 = vld [vmem:[%s2027_s7 + $0x58] sm:$0xff]  ;;  %v1092_v17 = vld [vmem:[%s2027_s7 + $0x60] sm:$0xff]  ;;  %v1093_v18 = vld [vmem:[%s2027_s7 + $0x68] sm:$0xff] }
  0xdb   :  { %v233_v11 = vadd.f32 %v217_v8, %v136_v55  ;;  %v408_v8 = vld [vmem:[%s2028_s3 + $0x98] sm:$0xff] }
  0xdc   :  { %623 = vmatpush.msra.mxu0 %v378_v63  ;;  %1236 = vmatpush.msra.mxu3 %v378_v63  ;;  %v229_v39 = vadd.f32 %v213_v30, %v132_v32  ;;  %v1081_v63 = vld [vmem:[%s2027_s7 + $0x8] sm:$0xff]  ;;  %v1087_v55 = vld [vmem:[%s2027_s7 + $0x38] sm:$0xff]  ;;  %v415_v30 = vld [vmem:[%s2028_s3 + $0xd0] sm:$0xff] }
  0xdd   :  { %885 = vperm.xlu0 %1257, %v831_v1   ;;  %v391_v1 = vld [vmem:[%s2028_s3 + $0x10] sm:$0xff]  ;;  %v401_v32 = vld [vmem:[%s2028_s3 + $0x60] sm:$0xff] }
  0xdf   :  { %540 = vperm.xlu1 %1255, %v438_v2   ;;  %v274_v21 = vpop.permute.xlu0 %273  ;;  %v407_v2 = vld [vmem:[%s2028_s3 + $0x90] sm:$0xff] }
  0xe0   :  { %v162_v4 = vpop.permute.xlu1 %161  ;;  %v343_v35 = vadd.f32 %v274_v21, %v231_v22  ;;  %v412_v22 = vld [vmem:[%s2028_s3 + $0xb8] sm:$0xff] }
  0xe1   :  { %535 = vperm.xlu2 %1258, %v437_v3   ;;  %v216_v27 = vmul.f32 %v1483_v54, %v162_v4  ;;  %v230_v54 = vadd.f32 %v214_v25, %v133_v12  ;;  %v14_v3 = vstv %s2029_s8  ;;  %v1094_v4 = vld [vmem:[%s2027_s7 + $0x70] sm:$0xff]  ;;  %v417_v25 = vld [vmem:[%s2028_s3 + $0xe0] sm:$0xff]  ;;  %v404_v12 = vld [vmem:[%s2028_s3 + $0x78] sm:$0xff] }
  0xe2   :  { %v359_v33 = vmul.f32 0.01, %v343_v35  ;;  %v264_v38 = vpop.permute.xlu2 %263  ;;  %15 = vst [vmem:[#allocation2] sm:$0x1] %v14_v3 }
  0xe3   :  { %v232_v26 = vadd.f32 %v216_v27, %v135_v0  ;;  %v341_v36 = vadd.f32 %v264_v38, %v229_v39  ;;  %v395_v27 = vld [vmem:[%s2028_s3 + $0x30] sm:$0xff]  ;;  %v396_v0 = vld [vmem:[%s2028_s3 + $0x38] sm:$0xff] }
  0xe4   :  { %v375_v45 = vmax.f32 %v343_v35, %v359_v33  ;;  %v398_v35 = vld [vmem:[%s2028_s3 + $0x48] sm:$0xff]  ;;  %v419_v38 = vld [vmem:[%s2028_s3 + $0xf0] sm:$0xff]  ;;  %v420_v39 = vld [vmem:[%s2028_s3 + $0xf8] sm:$0xff] }
  0xe5   :  { %900 = vperm.xlu0 %1257, %v834_v6   ;;  %v357_v57 = vmul.f32 0.01, %v341_v36  ;;  %v1084_v6 = vld [vmem:[%s2027_s7 + $0x20] sm:$0xff]  ;;  %v402_v33 = vld [vmem:[%s2028_s3 + $0x68] sm:$0xff] }
  0xe7   :  { %845 = vperm.xlu1 %1255, %v823_v9   ;;  %v373_v53 = vmax.f32 %v341_v36, %v357_v57  ;;  %v1086_v9 = vld [vmem:[%s2027_s7 + $0x30] sm:$0xff] }
  0xe9   :  { %v284_v13 = vpop.permute.xlu1 %283  ;;  %850 = vperm.xlu2 %1258, %v824_v10   ;;  %v393_v10 = vld [vmem:[%s2028_s3 + $0x20] sm:$0xff] }
  0xea   :  { %v345_v15 = vadd.f32 %v284_v13, %v233_v11  ;;  %v409_v11 = vld [vmem:[%s2028_s3 + $0xa0] sm:$0xff]  ;;  %v1089_v13 = vld [vmem:[%s2027_s7 + $0x48] sm:$0xff] }
  0xeb   :  { %v1213_v21 = vld [vmem:[#allocation2] sm:$0x1] }
  0xec   :  { %v361_v19 = vmul.f32 0.01, %v345_v15 }
  0xed   :  { %915 = vperm.xlu0 %1257, %v837_v16   ;;  %v410_v16 = vld [vmem:[%s2028_s3 + $0xa8] sm:$0xff] }
  0xee   :  { %v377_v23 = vmax.f32 %v345_v15, %v361_v19  ;;  %v394_v15 = vld [vmem:[%s2028_s3 + $0x28] sm:$0xff]  ;;  %v411_v19 = vld [vmem:[%s2028_s3 + $0xb0] sm:$0xff] }
  0xef   :  { %860 = vperm.xlu1 %1255, %v826_v20   ;;  %v1095_v20 = vld [vmem:[%s2027_s7 + $0x78] sm:$0xff] }
  0xf0   :  { %624 = vmatpush.msra.mxu0 %v377_v23  ;;  %1237 = vmatpush.msra.mxu3 %v377_v23  ;;  %v397_v23 = vld [vmem:[%s2028_s3 + $0x40] sm:$0xff] }
  0xf1   :  { %v279_v28 = vpop.permute.xlu1 %278  ;;  %865 = vperm.xlu2 %1258, %v827_v24   ;;  %v413_v24 = vld [vmem:[%s2028_s3 + $0xc0] sm:$0xff] }
  0xf2   :  { %v344_v31 = vadd.f32 %v279_v28, %v232_v26  ;;  %v414_v26 = vld [vmem:[%s2028_s3 + $0xc8] sm:$0xff]  ;;  %v399_v28 = vld [vmem:[%s2028_s3 + $0x50] sm:$0xff] }
  0xf4   :  { %v360_v34 = vmul.f32 0.01, %v344_v31 }
  0xf5   :  { %1108 = vperm.xlu0 %1257, %v1082_v40   ;;  %v416_v40 = vld [vmem:[%s2028_s3 + $0xd8] sm:$0xff] }
  0xf6   :  { %v376_v43 = vmax.f32 %v344_v31, %v360_v34  ;;  %v400_v31 = vld [vmem:[%s2028_s3 + $0x58] sm:$0xff]  ;;  %v418_v34 = vld [vmem:[%s2028_s3 + $0xe8] sm:$0xff] }
  0xf7   :  { %875 = vperm.xlu1 %1255, %v829_v37   ;;  %v403_v37 = vld [vmem:[%s2028_s3 + $0x70] sm:$0xff] }
  0xf8   :  { %625 = vmatpush.msra.mxu0 %v376_v43  ;;  %1238 = vmatpush.msra.mxu3 %v376_v43 }
  0xf9   :  { %v269_v42 = vpop.permute.xlu1 %268  ;;  %880 = vperm.xlu2 %1258, %v830_v44  }
  0xfa   :  { %v342_v47 = vadd.f32 %v269_v42, %v230_v54  ;;  %626 = vmatpush.msra.mxu0 %v375_v45  ;;  %1239 = vmatpush.msra.mxu3 %v375_v45  ;;  %v466_v45 = vpop.permute.xlu0 %465 }
  0xfc   :  { %v358_v49 = vmul.f32 0.01, %v342_v47 }
  0xfd   :  { %1123 = vperm.xlu0 %1257, %v1085_v41  }
  0xfe   :  { %v374_v29 = vmax.f32 %v342_v47, %v358_v49 }
  0xff   :  { %890 = vperm.xlu1 %1255, %v832_v50  }
 0x100   :  { %627 = vmatpush.msra.mxu0 %v374_v29  ;;  %1240 = vmatpush.msra.mxu3 %v374_v29 }
 0x101   :  { %895 = vperm.xlu2 %1258, %v833_v51  }
 0x102   :  { %628 = vmatpush.msra.mxu0 %v373_v53  ;;  %1241 = vmatpush.msra.mxu3 %v373_v53 }
 0x103   :  { %629 = vmatmul.f32.vlgmr.msra.gmra.mxu0 %v389_v52  ;;  %677 = vmatmul.f32.vlgmr.msra.gmra.mxu3 %v405_v56  ;;  %v1843_v56 = vpop.permute.xlu1 %455 }
 0x104   :  { %2039 = vst [vmem:[#allocation9_spill] sm:$0xff] %v1843_v56 }
 0x105   :  { %1138 = vperm.xlu0 %1257, %v1088_v46   ;;  %v1845_v46 = vpop.permute.xlu2 %460 }
 0x107   :  { %905 = vperm.xlu1 %1255, %v835_v58  }
 0x109   :  { %910 = vperm.xlu2 %1258, %v836_v59  }
 0x10b   :  { %632 = vmatmul.f32.gmra.mxu0 %v390_v60  ;;  %680 = vmatmul.f32.gmra.mxu3 %v406_v61  ;;  %v1851_v60 = vpop.permute.xlu1 %470 }
 0x10d   :  { %1153 = vperm.xlu0 %1257, %v1091_v48   ;;  %v1853_v61 = vpop.permute.xlu2 %475 }
 0x10f   :  { %1098 = vperm.xlu1 %1255, %v1080_v62  }
 0x111   :  { %1103 = vperm.xlu2 %1258, %v1081_v63   ;;  %v1857_v63 = vpop.permute.xlu0 %480 }
 0x113   :  { %635 = vmatmul.f32.gmra.mxu0 %v391_v1  ;;  %683 = vmatmul.f32.gmra.mxu3 %v407_v2  ;;  %v1859_v1 = vpop.permute.xlu1 %485 }
 0x115   :  { %1168 = vperm.xlu0 %1257, %v1094_v4   ;;  %v611_v3 = vpop.permute.xlu2 %610 }
 0x117   :  { %1113 = vperm.xlu1 %1255, %v1083_v5  }
 0x119   :  { %1118 = vperm.xlu2 %1258, %v1084_v6   ;;  %v606_v5 = vpop.permute.xlu0 %605 }
 0x11b   :  { %638 = vmatmul.f32.gmra.mxu0 %v392_v7  ;;  %686 = vmatmul.f32.gmra.mxu3 %v408_v8  ;;  %v531_v7 = vpop.permute.xlu1 %530 }
 0x11f   :  { %1128 = vperm.xlu1 %1255, %v1086_v9   ;;  %v601_v9 = vpop.permute.xlu2 %600 }
 0x121   :  { %1133 = vperm.xlu2 %1258, %v1087_v55  }
 0x123   :  { %641 = vmatmul.f32.gmra.mxu0 %v393_v10  ;;  %689 = vmatmul.f32.gmra.mxu3 %v409_v11  ;;  %v526_v10 = vpop.permute.xlu0 %525 }
 0x127   :  { %1143 = vperm.xlu1 %1255, %v1089_v13   ;;  %v596_v13 = vpop.permute.xlu1 %595 }
 0x129   :  { %1148 = vperm.xlu2 %1258, %v1090_v14   ;;  %v521_v14 = vpop.permute.xlu2 %520 }
 0x12b   :  { %644 = vmatmul.f32.gmra.mxu0 %v394_v15  ;;  %692 = vmatmul.f32.gmra.mxu3 %v410_v16 }
 0x12f   :  { %1158 = vperm.xlu1 %1255, %v1092_v17   ;;  %v591_v17 = vpop.permute.xlu0 %590 }
 0x131   :  { %1163 = vperm.xlu2 %1258, %v1093_v18   ;;  %v516_v18 = vpop.permute.xlu1 %515 }
 0x133   :  { %647 = vmatmul.f32.gmra.mxu0 %v395_v27  ;;  %695 = vmatmul.f32.gmra.mxu3 %v411_v19  ;;  %v586_v27 = vpop.permute.xlu2 %585 }
 0x137   :  { %1173 = vperm.xlu1 %1255, %v1095_v20  }
 0x139   :  { %1216 = vperm.xlu2 %1258, %v1213_v21   ;;  %v511_v21 = vpop.permute.xlu0 %510 }
 0x13b   :  { %650 = vmatmul.f32.gmra.mxu0 %v396_v0  ;;  %698 = vmatmul.f32.gmra.mxu3 %v412_v22  ;;  %v581_v0 = vpop.permute.xlu1 %580 }
 0x143   :  { %653 = vmatmul.f32.gmra.mxu0 %v397_v23  ;;  %701 = vmatmul.f32.gmra.mxu3 %v413_v24  ;;  %v506_v23 = vpop.permute.xlu2 %505 }
 0x14b   :  { %656 = vmatmul.f32.gmra.mxu0 %v398_v35  ;;  %704 = vmatmul.f32.gmra.mxu3 %v414_v26  ;;  %v576_v35 = vpop.permute.xlu0 %575 }
 0x153   :  { %659 = vmatmul.f32.gmra.mxu0 %v399_v28  ;;  %707 = vmatmul.f32.gmra.mxu3 %v415_v30  ;;  %v501_v30 = vpop.permute.xlu1 %500 }
 0x15b   :  { %662 = vmatmul.f32.gmra.mxu0 %v400_v31  ;;  %710 = vmatmul.f32.gmra.mxu3 %v416_v40  ;;  %v571_v40 = vpop.permute.xlu2 %570 }
 0x163   :  { %665 = vmatmul.f32.gmra.mxu0 %v401_v32  ;;  %713 = vmatmul.f32.gmra.mxu3 %v417_v25 }
 0x16b   :  { %668 = vmatmul.f32.gmra.mxu0 %v402_v33  ;;  %716 = vmatmul.f32.gmra.mxu3 %v418_v34 }
 0x173   :  { %671 = vmatmul.f32.gmra.mxu0 %v403_v37  ;;  %719 = vmatmul.f32.gmra.mxu3 %v419_v38 }
 0x17b   :  { %674 = vmatmul.f32.gmra.mxu0 %v404_v12  ;;  %722 = vmatmul.f32.gmra.mxu3 %v420_v39 }
 0x180   :  { %v1817_v43 = vpop.f32.mrf.mxu0 }
 0x181   :  { %2033 = vst [vmem:[#allocation3_spill] sm:$0xff] %v1817_v43 }
 0x186   :  { %v1819_v44 = vpop.f32.mrf.mxu3 }
 0x187   :  { %2034 = vst [vmem:[#allocation4_spill] sm:$0xff] %v1819_v44 }
 0x188   :  { %v1821_v36 = vpop.f32.mrf.mxu0 }
 0x18e   :  { %v1823_v54 = vpop.f32.mrf.mxu3 }
 0x18f   :  { %2035 = vst [vmem:[#allocation5_spill] sm:$0xff] %v1823_v54 }
 0x190   :  { %v636_v42 = vpop.f32.mrf.mxu0 }
 0x191   :  { %v1825_v47 = vadd.f32 %v636_v42, %v466_v45 }
 0x193   :  { %2036 = vst [vmem:[#allocation6_spill] sm:$0xff] %v1825_v47 }
 0x196   :  { %v1827_v41 = vpop.f32.mrf.mxu3 }
 0x197   :  { %2037 = vst [vmem:[#allocation7_spill] sm:$0xff] %v1827_v41 }
 0x198   :  { %v1829_v57 = vpop.f32.mrf.mxu0 }
 0x19e   :  { %v1831_v49 = vpop.f32.mrf.mxu3 }
 0x19f   :  { %2038 = vst [vmem:[#allocation8_spill] sm:$0xff] %v1831_v49 }
 0x1a0   :  { %v1833_v50 = vpop.f32.mrf.mxu0 }
 0x1a6   :  { %v1835_v29 = vpop.f32.mrf.mxu3 }
 0x1a8   :  { %v1837_v51 = vpop.f32.mrf.mxu0 }
 0x1ae   :  { %v1839_v53 = vpop.f32.mrf.mxu3 }
 0x1b0   :  { %v1841_v52 = vpop.f32.mrf.mxu0 }
 0x1b6   :  { %v1847_v58 = vpop.f32.mrf.mxu3 }
 0x1b8   :  { %v1849_v59 = vpop.f32.mrf.mxu0 }
 0x1be   :  { %v1855_v48 = vpop.f32.mrf.mxu3 }
 0x1c0   :  { %v654_v62 = vpop.f32.mrf.mxu0 }
 0x1c6   :  { %v1861_v2 = vpop.f32.mrf.mxu3 }
 0x1c8   :  { %v657_v4 = vpop.f32.mrf.mxu0 }
 0x1ce   :  { %v1863_v6 = vpop.f32.mrf.mxu3 }
 0x1d0   :  { %v660_v8 = vpop.f32.mrf.mxu0 }
 0x1d1   :  { %v661_v42 = vadd.f32 %v660_v8, %v506_v23 }
 0x1d6   :  { %v708_v55 = vpop.f32.mrf.mxu3 }
 0x1d8   :  { %v663_v11 = vpop.f32.mrf.mxu0 }
 0x1d9   :  { %v664_v38 = vadd.f32 %v663_v11, %v511_v21 }
 0x1db   :  { %v737_v43 = vmul.f32 0.01, %v664_v38 }
 0x1de   :  { %v711_v15 = vpop.f32.mrf.mxu3 }
 0x1df   :  { %v712_v21 = vadd.f32 %v711_v15, %v591_v17  ;;  %v703_v17 = vadd.f32 %v1861_v2, %v576_v35  ;;  %v640_v2 = vadd.f32 %v1829_v57, %v1851_v60  ;;  %v634_v57 = vadd.f32 %v1821_v36, %v1845_v46 }
 0x1e0   :  { %v666_v16 = vpop.f32.mrf.mxu0 }
 0x1e1   :  { %v667_v33 = vadd.f32 %v666_v16, %v516_v18  ;;  %v566_v18 = vpop.permute.xlu1 %565  ;;  %v753_v15 = vmul.f32 0.01, %v712_v21  ;;  %v729_v60 = vmul.f32 0.01, %v640_v2 }
 0x1e3   :  { %v738_v54 = vmul.f32 0.01, %v667_v33 }
 0x1e5   :  { %v770_v23 = vmax.f32 %v667_v33, %v738_v54 }
 0x1e6   :  { %v714_v19 = vpop.f32.mrf.mxu3 }
 0x1e7   :  { %v715_v56 = vadd.f32 %v714_v19, %v596_v13  ;;  %v769_v13 = vmax.f32 %v664_v38, %v737_v43  ;;  %v649_v19 = vadd.f32 %v1841_v52, %v1859_v1  ;;  %v643_v1 = vadd.f32 %v1833_v50, %v1853_v61 }
 0x1e8   :  { %v669_v20 = vpop.f32.mrf.mxu0 }
 0x1e9   :  { %v670_v32 = vadd.f32 %v669_v20, %v521_v14  ;;  %v736_v20 = vmul.f32 0.01, %v661_v42 }
 0x1eb   :  { %v739_v12 = vmul.f32 0.01, %v670_v32  ;;  %v768_v54 = vmax.f32 %v661_v42, %v736_v20 }
 0x1ee   :  { %v717_v22 = vpop.f32.mrf.mxu3 }
 0x1ef   :  { %v718_v41 = vadd.f32 %v717_v22, %v601_v9  ;;  %v709_v22 = vadd.f32 %v708_v55, %v586_v27 }
 0x1f0   :  { %v672_v24 = vpop.f32.mrf.mxu0 }
 0x1f1   :  { %v673_v28 = vadd.f32 %v672_v24, %v526_v10  ;;  %v496_v10 = vpop.permute.xlu0 %495  ;;  %v658_v24 = vadd.f32 %v657_v4, %v501_v30  ;;  %v755_v8 = vmul.f32 0.01, %v718_v41  ;;  %v754_v4 = vmul.f32 0.01, %v715_v56 }
 0x1f2   :  { %v655_v11 = vadd.f32 %v654_v62, %v496_v10  ;;  %v752_v27 = vmul.f32 0.01, %v709_v22 }
 0x1f3   :  { %v740_v34 = vmul.f32 0.01, %v673_v28 }
 0x1f4   :  { %v734_v62 = vmul.f32 0.01, %v655_v11  ;;  %v784_v50 = vmax.f32 %v709_v22, %v752_v27 }
 0x1f5   :  { %v772_v47 = vmax.f32 %v673_v28, %v740_v34  ;;  %v786_v28 = vmax.f32 %v715_v56, %v754_v4  ;;  %v750_v56 = vmul.f32 0.01, %v703_v17 }
 0x1f6   :  { %v720_v26 = vpop.f32.mrf.mxu3 }
 0x1f7   :  { %v721_v39 = vadd.f32 %v720_v26, %v606_v5  ;;  %v491_v5 = vpop.permute.xlu2 %490  ;;  %v706_v26 = vadd.f32 %v1863_v6, %v581_v0  ;;  %v732_v6 = vmul.f32 0.01, %v649_v19  ;;  %v700_v0 = vadd.f32 %v1855_v48, %v571_v40 }
 0x1f8   :  { %v675_v31 = vpop.f32.mrf.mxu0 }
 0x1f9   :  { %v676_v25 = vadd.f32 %v675_v31, %v531_v7  ;;  %v756_v14 = vmul.f32 0.01, %v721_v39  ;;  %v771_v7 = vmax.f32 %v670_v32, %v739_v12  ;;  %v561_v52 = vpop.permute.xlu0 %560  ;;  %v751_v30 = vmul.f32 0.01, %v706_v26 }
 0x1fa   :  { %v697_v31 = vadd.f32 %v1847_v58, %v566_v18  ;;  %v694_v48 = vadd.f32 %v1839_v53, %v561_v52  ;;  %v749_v40 = vmul.f32 0.01, %v700_v0  ;;  %v764_v33 = vmax.f32 %v649_v19, %v732_v6  ;;  %v2042_v53 = vld [vmem:[#allocation6_spill] sm:$0xff]  ;;  %v791_v52 = vld [vmem:[%s2030_s5 + $0x8] sm:$0xff] }
 0x1fb   :  { %v741_v37 = vmul.f32 0.01, %v676_v25  ;;  %v783_v34 = vmax.f32 %v706_v26, %v751_v30  ;;  %v782_v12 = vmax.f32 %v703_v17, %v750_v56  ;;  %v728_v10 = vmul.f32 0.01, %v2042_v53  ;;  %v793_v6 = vld [vmem:[%s2030_s5 + $0x18] sm:$0xff]  ;;  %v795_v30 = vld [vmem:[%s2030_s5 + $0x28] sm:$0xff] }
 0x1fc   :  { %v781_v36 = vmax.f32 %v700_v0, %v749_v40  ;;  %v727_v18 = vmul.f32 0.01, %v634_v57  ;;  %v794_v0 = vld [vmem:[%s2030_s5 + $0x20] sm:$0xff]  ;;  %v808_v40 = vld [vmem:[%s2030_s5 + $0x90] sm:$0xff] }
 0x1fd   :  { %v773_v45 = vmax.f32 %v676_v25, %v741_v37  ;;  %v730_v25 = vmul.f32 0.01, %v643_v1  ;;  %v748_v37 = vmul.f32 0.01, %v697_v31  ;;  %v760_v22 = vmax.f32 %v2042_v53, %v728_v10  ;;  %v802_v56 = vld [vmem:[%s2030_s5 + $0x60] sm:$0xff]  ;;  %v817_v53 = vld [vmem:[%s2030_s5 + $0xd8] sm:$0xff] }
 0x1fe   :  { %v723_v44 = vpop.f32.mrf.mxu3  ;;  %v759_v26 = vmax.f32 %v634_v57, %v727_v18  ;;  %v811_v57 = vld [vmem:[%s2030_s5 + $0xa8] sm:$0xff] }
 0x1ff   :  { %v724_v49 = vadd.f32 %v723_v44, %v611_v3  ;;  %918 = vmatpush.msra.mxu1 %v773_v45  ;;  %v652_v44 = vadd.f32 %v1849_v59, %v491_v5  ;;  %v735_v3 = vmul.f32 0.01, %v658_v24  ;;  %v646_v59 = vadd.f32 %v1837_v51, %v1857_v63  ;;  %v556_v63 = vpop.permute.xlu1 %555  ;;  %v551_v61 = vpop.permute.xlu2 %550  ;;  %v2041_v45 = vld [vmem:[#allocation3_spill] sm:$0xff] }
 0x200   :  { %v785_v51 = vmax.f32 %v712_v21, %v753_v15  ;;  %v691_v58 = vadd.f32 %v1835_v29, %v556_v63  ;;  %v2044_v29 = vld [vmem:[#allocation7_spill] sm:$0xff]  ;;  %v761_v5 = vmax.f32 %v640_v2, %v729_v60  ;;  %v780_v21 = vmax.f32 %v697_v31, %v748_v37  ;;  %v801_v31 = vld [vmem:[%s2030_s5 + $0x58] sm:$0xff]  ;;  %v812_v60 = vld [vmem:[%s2030_s5 + $0xb0] sm:$0xff] }
 0x201   :  { %919 = vmatpush.msra.mxu1 %v772_v47  ;;  %v757_v16 = vmul.f32 0.01, %v724_v49  ;;  %v788_v47 = vmax.f32 %v721_v39, %v756_v14  ;;  %v733_v55 = vmul.f32 0.01, %v652_v44  ;;  %v767_v43 = vmax.f32 %v658_v24, %v735_v3  ;;  %v2040_v39 = vld [vmem:[#allocation9_spill] sm:$0xff]  ;;  %v2043_v24 = vld [vmem:[#allocation8_spill] sm:$0xff]  ;;  %v546_v46 = vpop.permute.xlu0 %545 }
 0x202   :  { %v731_v35 = vmul.f32 0.01, %v646_v59  ;;  %v631_v42 = vadd.f32 %v2041_v45, %v2040_v39  ;;  %v688_v14 = vadd.f32 %v2043_v24, %v551_v61  ;;  %v746_v20 = vmul.f32 0.01, %v691_v58  ;;  %v798_v63 = vld [vmem:[%s2030_s5 + $0x40] sm:$0xff]  ;;  %v799_v2 = vld [vmem:[%s2030_s5 + $0x48] sm:$0xff] }
 0x203   :  { %920 = vmatpush.msra.mxu1 %v771_v7  ;;  %v789_v9 = vmax.f32 %v724_v49, %v757_v16  ;;  %v787_v49 = vmax.f32 %v718_v41, %v755_v8  ;;  %v766_v41 = vmax.f32 %v655_v11, %v734_v62  ;;  %v765_v32 = vmax.f32 %v652_v44, %v733_v55  ;;  %v790_v55 = vld [vmem:[%s2030_s5] sm:$0xff]  ;;  %v805_v61 = vld [vmem:[%s2030_s5 + $0x78] sm:$0xff] }
 0x204   :  { %v763_v38 = vmax.f32 %v646_v59, %v731_v35  ;;  %v747_v7 = vmul.f32 0.01, %v694_v48  ;;  %v762_v16 = vmax.f32 %v643_v1, %v730_v25  ;;  %v685_v11 = vadd.f32 %v2044_v29, %v546_v46  ;;  %v792_v1 = vld [vmem:[%s2030_s5 + $0x10] sm:$0xff]  ;;  %v806_v25 = vld [vmem:[%s2030_s5 + $0x80] sm:$0xff] }
 0x205   :  { %921 = vmatpush.msra.mxu1 %v770_v23  ;;  %983 = vmatpush.msra.mxu2 %v789_v9  ;;  %v726_v23 = vmul.f32 0.01, %v631_v42  ;;  %v2045_v9 = vld [vmem:[#allocation5_spill] sm:$0xff]  ;;  %v745_v3 = vmul.f32 0.01, %v688_v14  ;;  %v778_v15 = vmax.f32 %v691_v58, %v746_v20  ;;  %v814_v37 = vld [vmem:[%s2030_s5 + $0xc0] sm:$0xff] }
 0x206   :  { %v779_v4 = vmax.f32 %v694_v48, %v747_v7  ;;  %v744_v62 = vmul.f32 0.01, %v685_v11  ;;  %v800_v35 = vld [vmem:[%s2030_s5 + $0x50] sm:$0xff]  ;;  %v807_v48 = vld [vmem:[%s2030_s5 + $0x88] sm:$0xff]  ;;  %v813_v58 = vld [vmem:[%s2030_s5 + $0xb8] sm:$0xff] }
 0x207   :  { %922 = vmatpush.msra.mxu1 %v769_v13  ;;  %984 = vmatpush.msra.mxu2 %v788_v47  ;;  %v541_v8 = vpop.permute.xlu1 %540  ;;  %v536_v13 = vpop.permute.xlu2 %535  ;;  %v2046_v47 = vld [vmem:[#allocation4_spill] sm:$0xff]  ;;  %v777_v59 = vmax.f32 %v688_v14, %v745_v3  ;;  %v818_v24 = vld [vmem:[%s2030_s5 + $0xe0] sm:$0xff] }
 0x208   :  { %v682_v44 = vadd.f32 %v2045_v9, %v541_v8  ;;  %v679_v19 = vadd.f32 %v2046_v47, %v536_v13  ;;  %v776_v27 = vmax.f32 %v685_v11, %v744_v62  ;;  %v821_v11 = vld [vmem:[%s2030_s5 + $0xf8] sm:$0xff] }
 0x209   :  { %923 = vmatpush.msra.mxu1 %v768_v54  ;;  %985 = vmatpush.msra.mxu2 %v787_v49  ;;  %v758_v49 = vmax.f32 %v631_v42, %v726_v23  ;;  %v816_v42 = vld [vmem:[%s2030_s5 + $0xd0] sm:$0xff] }
 0x20a   :  { %v743_v54 = vmul.f32 0.01, %v682_v44  ;;  %v742_v17 = vmul.f32 0.01, %v679_v19 }
 0x20b   :  { %924 = vmatpush.msra.mxu1 %v767_v43  ;;  %986 = vmatpush.msra.mxu2 %v786_v28 }
 0x20c   :  { %v775_v43 = vmax.f32 %v682_v44, %v743_v54  ;;  %v774_v28 = vmax.f32 %v679_v19, %v742_v17 }
 0x20d   :  { %925 = vmatpush.msra.mxu1 %v766_v41  ;;  %987 = vmatpush.msra.mxu2 %v785_v51  ;;  %v796_v41 = vld [vmem:[%s2030_s5 + $0x30] sm:$0xff]  ;;  %v797_v51 = vld [vmem:[%s2030_s5 + $0x38] sm:$0xff] }
 0x20f   :  { %926 = vmatpush.msra.mxu1 %v765_v32  ;;  %988 = vmatpush.msra.mxu2 %v784_v50  ;;  %v803_v32 = vld [vmem:[%s2030_s5 + $0x68] sm:$0xff]  ;;  %v804_v50 = vld [vmem:[%s2030_s5 + $0x70] sm:$0xff]  ;;  %v851_v39 = vpop.permute.xlu2 %850  ;;  %v846_v45 = vpop.permute.xlu1 %845 }
 0x211   :  { %927 = vmatpush.msra.mxu1 %v764_v33  ;;  %989 = vmatpush.msra.mxu2 %v783_v34  ;;  %v809_v33 = vld [vmem:[%s2030_s5 + $0x98] sm:$0xff]  ;;  %v810_v34 = vld [vmem:[%s2030_s5 + $0xa0] sm:$0xff] }
 0x213   :  { %928 = vmatpush.msra.mxu1 %v763_v38  ;;  %990 = vmatpush.msra.mxu2 %v782_v12  ;;  %v841_v38 = vpop.permute.xlu0 %840  ;;  %v815_v12 = vld [vmem:[%s2030_s5 + $0xc8] sm:$0xff] }
 0x215   :  { %929 = vmatpush.msra.mxu1 %v762_v16  ;;  %991 = vmatpush.msra.mxu2 %v781_v36  ;;  %v819_v16 = vld [vmem:[%s2030_s5 + $0xe8] sm:$0xff]  ;;  %v820_v36 = vld [vmem:[%s2030_s5 + $0xf0] sm:$0xff] }
 0x217   :  { %930 = vmatpush.msra.mxu1 %v761_v5  ;;  %992 = vmatpush.msra.mxu2 %v780_v21  ;;  %v1977_v14 = vpop.permute.xlu2 %865  ;;  %v861_v7 = vpop.permute.xlu1 %860 }
 0x219   :  { %931 = vmatpush.msra.mxu1 %v760_v22  ;;  %993 = vmatpush.msra.mxu2 %v779_v4 }
 0x21b   :  { %932 = vmatpush.msra.mxu1 %v759_v26  ;;  %994 = vmatpush.msra.mxu2 %v778_v15  ;;  %v856_v10 = vpop.permute.xlu0 %855 }
 0x21d   :  { %933 = vmatpush.msra.mxu1 %v758_v49  ;;  %995 = vmatpush.msra.mxu2 %v777_v59 }
 0x21e   :  { %934 = vmatmul.f32.vlgmr.msra.gmra.mxu1 %v790_v55 }
 0x21f   :  { %996 = vmatpush.msra.mxu2 %v776_v27  ;;  %v1987_v18 = vpop.permute.xlu2 %880  ;;  %v1989_v29 = vpop.permute.xlu1 %875 }
 0x221   :  { %997 = vmatpush.msra.mxu2 %v775_v43 }
 0x223   :  { %998 = vmatpush.msra.mxu2 %v774_v28  ;;  %v1985_v46 = vpop.permute.xlu0 %870 }
 0x224   :  { %999 = vmatmul.f32.vlgmr.msra.gmra.mxu2 %v791_v52 }
 0x226   :  { %937 = vmatmul.f32.gmra.mxu1 %v792_v1 }
 0x227   :  { %v1996_v21 = vpop.permute.xlu2 %895  ;;  %v1998_v8 = vpop.permute.xlu1 %890 }
 0x22b   :  { %v1994_v5 = vpop.permute.xlu0 %885 }
 0x22c   :  { %1002 = vmatmul.f32.gmra.mxu2 %v793_v6 }
 0x22e   :  { %940 = vmatmul.f32.gmra.mxu1 %v794_v0 }
 0x22f   :  { %v2002_v4 = vpop.permute.xlu2 %910  ;;  %v2004_v13 = vpop.permute.xlu1 %905 }
 0x233   :  { %v2000_v22 = vpop.permute.xlu0 %900 }
 0x234   :  { %1005 = vmatmul.f32.gmra.mxu2 %v795_v30 }
 0x236   :  { %943 = vmatmul.f32.gmra.mxu1 %v796_v41 }
 0x237   :  { %v1104_v27 = vpop.permute.xlu2 %1103  ;;  %v1099_v43 = vpop.permute.xlu1 %1098 }
 0x23b   :  { %v2006_v59 = vpop.permute.xlu0 %915 }
 0x23c   :  { %1008 = vmatmul.f32.gmra.mxu2 %v797_v51 }
 0x23e   :  { %946 = vmatmul.f32.gmra.mxu1 %v798_v63 }
 0x244   :  { %1011 = vmatmul.f32.gmra.mxu2 %v799_v2  ;;  %v1109_v2 = vpop.permute.xlu0 %1108 }
 0x246   :  { %949 = vmatmul.f32.gmra.mxu1 %v800_v35 }
 0x24c   :  { %1014 = vmatmul.f32.gmra.mxu2 %v801_v31 }
 0x24e   :  { %952 = vmatmul.f32.gmra.mxu1 %v802_v56 }
 0x254   :  { %1017 = vmatmul.f32.gmra.mxu2 %v803_v32 }
 0x256   :  { %955 = vmatmul.f32.gmra.mxu1 %v804_v50 }
 0x25c   :  { %1020 = vmatmul.f32.gmra.mxu2 %v805_v61 }
 0x25e   :  { %958 = vmatmul.f32.gmra.mxu1 %v806_v25 }
 0x264   :  { %1023 = vmatmul.f32.gmra.mxu2 %v807_v48 }
 0x266   :  { %961 = vmatmul.f32.gmra.mxu1 %v808_v40  ;;  %v1114_v40 = vpop.permute.xlu1 %1113 }
 0x26c   :  { %1026 = vmatmul.f32.gmra.mxu2 %v809_v33 }
 0x26e   :  { %964 = vmatmul.f32.gmra.mxu1 %v810_v34 }
 0x274   :  { %1029 = vmatmul.f32.gmra.mxu2 %v811_v57 }
 0x276   :  { %967 = vmatmul.f32.gmra.mxu1 %v812_v60 }
 0x27c   :  { %1032 = vmatmul.f32.gmra.mxu2 %v813_v58 }
 0x27e   :  { %970 = vmatmul.f32.gmra.mxu1 %v814_v37 }
 0x284   :  { %1035 = vmatmul.f32.gmra.mxu2 %v815_v12 }
 0x286   :  { %973 = vmatmul.f32.gmra.mxu1 %v816_v42 }
 0x28c   :  { %1038 = vmatmul.f32.gmra.mxu2 %v817_v53 }
 0x28e   :  { %976 = vmatmul.f32.gmra.mxu1 %v818_v24 }
 0x294   :  { %1041 = vmatmul.f32.gmra.mxu2 %v819_v16 }
 0x296   :  { %979 = vmatmul.f32.gmra.mxu1 %v820_v36 }
 0x29b   :  { %v935_v20 = vpop.f32.mrf.mxu1 }
 0x29c   :  { %1044 = vmatmul.f32.gmra.mxu2 %v821_v11  ;;  %v936_v9 = vadd.f32 %v935_v20, %v841_v38 }
 0x2a3   :  { %v938_v23 = vpop.f32.mrf.mxu1 }
 0x2a4   :  { %v939_v19 = vadd.f32 %v938_v23, %v846_v45 }
 0x2a7   :  { %v1000_v44 = vpop.f32.mrf.mxu2 }
 0x2a8   :  { %v1001_v3 = vadd.f32 %v1000_v44, %v936_v9 }
 0x2aa   :  { %v1048_v62 = vmul.f32 0.01, %v1001_v3 }
 0x2ab   :  { %v941_v47 = vpop.f32.mrf.mxu1 }
 0x2ac   :  { %v1064_v54 = vmax.f32 %v1001_v3, %v1048_v62  ;;  %v942_v52 = vadd.f32 %v941_v47, %v851_v39  ;;  %v1119_v39 = vpop.permute.xlu2 %1118  ;;  %v1124_v62 = vpop.permute.xlu0 %1123 }
 0x2ae   :  { %v1176_v28 = vmul.f32 %v1099_v43, %v1064_v54 }
 0x2af   :  { %v1003_v26 = vpop.f32.mrf.mxu2 }
 0x2b0   :  { %v1004_v15 = vadd.f32 %v1003_v26, %v939_v19 }
 0x2b2   :  { %v1049_v49 = vmul.f32 0.01, %v1004_v15 }
 0x2b3   :  { %v944_v55 = vpop.f32.mrf.mxu1 }
 0x2b4   :  { %v1065_v17 = vmax.f32 %v1004_v15, %v1049_v49  ;;  %v945_v35 = vadd.f32 %v944_v55, %v856_v10  ;;  %v1129_v55 = vpop.permute.xlu1 %1128 }
 0x2b6   :  { %v1177_v1 = vmul.f32 %v1104_v27, %v1065_v17 }
 0x2b7   :  { %v1006_v6 = vpop.f32.mrf.mxu2 }
 0x2b8   :  { %v1192_v0 = vadd.f32 %v1177_v1, %v1176_v28  ;;  %v1007_v30 = vadd.f32 %v1006_v6, %v942_v52 }
 0x2ba   :  { %v1050_v41 = vmul.f32 0.01, %v1007_v30 }
 0x2bb   :  { %v947_v51 = vpop.f32.mrf.mxu1 }
 0x2bc   :  { %v1066_v63 = vmax.f32 %v1007_v30, %v1050_v41  ;;  %v948_v33 = vadd.f32 %v947_v51, %v861_v7  ;;  %v1134_v30 = vpop.permute.xlu2 %1133 }
 0x2be   :  { %v1178_v31 = vmul.f32 %v1109_v2, %v1066_v63  ;;  %v1139_v63 = vpop.permute.xlu0 %1138 }
 0x2bf   :  { %v1009_v56 = vpop.f32.mrf.mxu2 }
 0x2c0   :  { %v1193_v32 = vadd.f32 %v1192_v0, %v1178_v31  ;;  %v1010_v50 = vadd.f32 %v1009_v56, %v945_v35 }
 0x2c2   :  { %v1051_v61 = vmul.f32 0.01, %v1010_v50 }
 0x2c3   :  { %v950_v25 = vpop.f32.mrf.mxu1 }
 0x2c4   :  { %v1067_v48 = vmax.f32 %v1010_v50, %v1051_v61  ;;  %v951_v19 = vadd.f32 %v950_v25, %v1977_v14  ;;  %v1144_v25 = vpop.permute.xlu1 %1143 }
 0x2c6   :  { %v1179_v34 = vmul.f32 %v1114_v40, %v1067_v48 }
 0x2c7   :  { %v1012_v57 = vpop.f32.mrf.mxu2 }
 0x2c8   :  { %v1194_v60 = vadd.f32 %v1193_v32, %v1179_v34  ;;  %v1013_v58 = vadd.f32 %v1012_v57, %v948_v33 }
 0x2ca   :  { %v1052_v37 = vmul.f32 0.01, %v1013_v58 }
 0x2cb   :  { %v953_v38 = vpop.f32.mrf.mxu1 }
 0x2cc   :  { %v1068_v12 = vmax.f32 %v1013_v58, %v1052_v37  ;;  %v954_v26 = vadd.f32 %v953_v38, %v1985_v46 }
 0x2ce   :  { %v1180_v45 = vmul.f32 %v1119_v39, %v1068_v12  ;;  %v1149_v12 = vpop.permute.xlu2 %1148 }
 0x2cf   :  { %v1015_v42 = vpop.f32.mrf.mxu2 }
 0x2d0   :  { %v1195_v53 = vadd.f32 %v1194_v60, %v1180_v45  ;;  %v1016_v15 = vadd.f32 %v1015_v42, %v951_v19 }
 0x2d2   :  { %v1053_v17 = vmul.f32 0.01, %v1016_v15 }
 0x2d3   :  { %v956_v10 = vpop.f32.mrf.mxu1 }
 0x2d4   :  { %v957_v54 = vadd.f32 %v956_v10, %v1989_v29  ;;  %v1069_v14 = vmax.f32 %v1016_v15, %v1053_v17 }
 0x2d6   :  { %v1181_v56 = vmul.f32 %v1124_v62, %v1069_v14 }
 0x2d7   :  { %v1018_v24 = vpop.f32.mrf.mxu2 }
 0x2d8   :  { %v1019_v49 = vadd.f32 %v1018_v24, %v954_v26  ;;  %v1196_v60 = vadd.f32 %v1195_v53, %v1181_v56  ;;  %v1154_v24 = vpop.permute.xlu0 %1153 }
 0x2da   :  { %v1054_v1 = vmul.f32 0.01, %v1019_v49 }
 0x2db   :  { %v959_v16 = vpop.f32.mrf.mxu1 }
 0x2dc   :  { %v960_v52 = vadd.f32 %v959_v16, %v1987_v18  ;;  %v1070_v29 = vmax.f32 %v1019_v49, %v1054_v1 }
 0x2de   :  { %v1182_v48 = vmul.f32 %v1129_v55, %v1070_v29  ;;  %v1164_v55 = vpop.permute.xlu2 %1163 }
 0x2df   :  { %v1021_v36 = vpop.f32.mrf.mxu2 }
 0x2e0   :  { %v1022_v27 = vadd.f32 %v1021_v36, %v957_v54  ;;  %v1197_v39 = vadd.f32 %v1196_v60, %v1182_v48 }
 0x2e2   :  { %v1055_v41 = vmul.f32 0.01, %v1022_v27 }
 0x2e3   :  { %v962_v11 = vpop.f32.mrf.mxu1 }
 0x2e4   :  { %v963_v6 = vadd.f32 %v962_v11, %v1994_v5  ;;  %v1071_v32 = vmax.f32 %v1022_v27, %v1055_v41 }
 0x2e6   :  { %v1183_v58 = vmul.f32 %v1134_v30, %v1071_v32 }
 0x2e7   :  { %v1024_v20 = vpop.f32.mrf.mxu2 }
 0x2e8   :  { %v1025_v0 = vadd.f32 %v1024_v20, %v960_v52  ;;  %v1198_v16 = vadd.f32 %v1197_v39, %v1183_v58  ;;  %v1169_v52 = vpop.permute.xlu0 %1168 }
 0x2ea   :  { %v1056_v2 = vmul.f32 0.01, %v1025_v0 }
 0x2eb   :  { %v965_v23 = vpop.f32.mrf.mxu1 }
 0x2ec   :  { %v966_v46 = vadd.f32 %v965_v23, %v1998_v8  ;;  %v1072_v33 = vmax.f32 %v1025_v0, %v1056_v2 }
 0x2ee   :  { %v1184_v45 = vmul.f32 %v1139_v63, %v1072_v33 }
 0x2ef   :  { %v1027_v9 = vpop.f32.mrf.mxu2 }
 0x2f0   :  { %v1028_v51 = vadd.f32 %v1027_v9, %v963_v6  ;;  %v1199_v9 = vadd.f32 %v1198_v16, %v1184_v45 }
 0x2f2   :  { %v1057_v18 = vmul.f32 0.01, %v1028_v51 }
 0x2f3   :  { %v968_v7 = vpop.f32.mrf.mxu1 }
 0x2f4   :  { %v969_v35 = vadd.f32 %v968_v7, %v1996_v21  ;;  %v1073_v37 = vmax.f32 %v1028_v51, %v1057_v18 }
 0x2f6   :  { %v1185_v11 = vmul.f32 %v1144_v25, %v1073_v37 }
 0x2f7   :  { %v1030_v44 = vpop.f32.mrf.mxu2 }
 0x2f8   :  { %v1031_v31 = vadd.f32 %v1030_v44, %v966_v46  ;;  %v1200_v19 = vadd.f32 %v1199_v9, %v1185_v11 }
 0x2fa   :  { %v1058_v34 = vmul.f32 0.01, %v1031_v31 }
 0x2fb   :  { %v971_v3 = vpop.f32.mrf.mxu1 }
 0x2fc   :  { %v972_v61 = vadd.f32 %v971_v3, %v2000_v22  ;;  %v1074_v42 = vmax.f32 %v1031_v31, %v1058_v34  ;;  %v1159_v3 = vpop.permute.xlu1 %1158  ;;  %v1217_v31 = vpop.permute.xlu2 %1216 }
 0x2fd   :  { %v1219_v32 = vperm.slane %v1217_v31, 0 }
 0x2fe   :  { %v1186_v53 = vmul.f32 %v1149_v12, %v1074_v42 }
 0x2ff   :  { %v1033_v47 = vpop.f32.mrf.mxu2 }
 0x300   :  { %v1034_v5 = vadd.f32 %v1033_v47, %v969_v35  ;;  %v1201_v15 = vadd.f32 %v1200_v19, %v1186_v53 }
 0x302   :  { %v1059_v21 = vmul.f32 0.01, %v1034_v5 }
 0x303   :  { %v974_v43 = vpop.f32.mrf.mxu1 }
 0x304   :  { %v975_v8 = vadd.f32 %v974_v43, %v2004_v13  ;;  %v1075_v20 = vmax.f32 %v1034_v5, %v1059_v21  ;;  %v1174_v41 = vpop.permute.xlu1 %1173 }
 0x306   :  { %v1187_v62 = vmul.f32 %v1154_v24, %v1075_v20 }
 0x307   :  { %v1036_v28 = vpop.f32.mrf.mxu2 }
 0x308   :  { %v1037_v57 = vadd.f32 %v1036_v28, %v972_v61  ;;  %v1202_v27 = vadd.f32 %v1201_v15, %v1187_v62 }
 0x30a   :  { %v1060_v10 = vmul.f32 0.01, %v1037_v57 }
 0x30b   :  { %v977_v40 = vpop.f32.mrf.mxu1 }
 0x30c   :  { %v978_v22 = vadd.f32 %v977_v40, %v2002_v4  ;;  %v1076_v7 = vmax.f32 %v1037_v57, %v1060_v10 }
 0x30e   :  { %v1188_v54 = vmul.f32 %v1159_v3, %v1076_v7 }
 0x30f   :  { %v1039_v50 = vpop.f32.mrf.mxu2 }
 0x310   :  { %v1040_v38 = vadd.f32 %v1039_v50, %v975_v8  ;;  %v1203_v1 = vadd.f32 %v1202_v27, %v1188_v54 }
 0x312   :  { %v1061_v23 = vmul.f32 0.01, %v1040_v38 }
 0x313   :  { %v980_v47 = vpop.f32.mrf.mxu1 }
 0x314   :  { %v1077_v26 = vmax.f32 %v1040_v38, %v1061_v23  ;;  %v981_v4 = vadd.f32 %v980_v47, %v2006_v59 }
 0x316   :  { %v1189_v43 = vmul.f32 %v1164_v55, %v1077_v26 }
 0x317   :  { %v1042_v36 = vpop.f32.mrf.mxu2 }
 0x318   :  { %v1043_v13 = vadd.f32 %v1042_v36, %v978_v22  ;;  %v1204_v30 = vadd.f32 %v1203_v1, %v1189_v43 }
 0x31a   :  { %v1062_v44 = vmul.f32 0.01, %v1043_v13 }
 0x31c   :  { %v1078_v49 = vmax.f32 %v1043_v13, %v1062_v44 }
 0x31e   :  { %v1190_v6 = vmul.f32 %v1169_v52, %v1078_v49 }
 0x31f   :  { %v1045_v17 = vpop.f32.mrf.mxu2 }
 0x320   :  { %v1046_v28 = vadd.f32 %v1045_v17, %v981_v4  ;;  %v1205_v46 = vadd.f32 %v1204_v30, %v1190_v6 }
 0x322   :  { %v1063_v0 = vmul.f32 0.01, %v1046_v28 }
 0x324   :  { %v1079_v14 = vmax.f32 %v1046_v28, %v1063_v0 }
 0x326   :  { %v1191_v51 = vmul.f32 %v1174_v41, %v1079_v14 }
 0x328   :  { %v1206_v63 = vadd.f32 %v1205_v46, %v1191_v51 }
 0x32a   :  { %v1207_v29 = vrot.slane %v1206_v63, 4 }
 0x32c   :  { %v1208_v2 = vadd.f32 %v1207_v29, %v1206_v63 }
 0x32e   :  { %v1209_v35 = vrot.slane %v1208_v2, 2 }
 0x330   :  { %v1210_v59 = vadd.f32 %v1209_v35, %v1208_v2 }
 0x332   :  { %v1211_v56 = vrot.slane %v1210_v59, 1 }
 0x334   :  { %v1212_v50 = vadd.f32 %v1211_v56, %v1210_v59 }
 0x336   :  { %v1220_v18 = vadd.f32 %v1219_v32, %v1212_v50 }
 0x338   :  { %1221 = vst [vmem:[%s2031_s9] sm:$0x1] %v1220_v18 }

</bundles_post_ra>
